<compile_context>
chip_gen: v5e
topology: v5e:2x2
jax: 0.10.0
libtpu: 0.0.40
codegen_flags: <defaults>
</compile_context>

<pallas_src>
import functools

import jax
import jax.numpy as jnp
from jax.experimental import pallas as pl
from jax.experimental.pallas import tpu as pltpu


def _conv_bn_relu_kernel(w_ref, b_ref, x_ref, o_ref, *, tap_offsets, stride, relu):
    """Direct convolution as per-tap GEMMs on a row-flattened padded sample.

    w_ref: (T, Cout_p, Cin_p) bf16  BN-scale-folded weight, one matrix per tap
    b_ref: (Cout_p, 1)        f32   folded BN (+conv) bias
    x_ref: (Cin_p, Lp)        bf16  one sample, padded NCHW flattened over (H, W)
    o_ref: (Cout_p, Lout)     f32   Lout = Ho * Wp (Wp-wide rows; tail cols are
                                    discarded by the wrapper slice)
    """
    cout_p = o_ref.shape[0]
    lout = o_ref.shape[1]

    acc = jnp.zeros((cout_p, lout), jnp.float32)
    for t, off in enumerate(tap_offsets):            # static unroll over KH*KW taps
        if stride == 1:
            rhs = x_ref[:, pl.ds(off, lout)]          # contiguous flat view
        else:
            rhs = x_ref[:, pl.ds(off, lout, stride)]  # strided flat view
        acc = acc + jnp.dot(w_ref[t], rhs, preferred_element_type=jnp.float32)

    y = acc + b_ref[...]                              # per-channel bias, broadcast over lanes
    if relu:
        y = jnp.maximum(y, 0.0)
    o_ref[...] = y.astype(o_ref.dtype)


def basic_conv(x_nchw, weight, bn_gamma=None, bn_beta=None, bn_mean=None, bn_var=None,
               *, stride=1, padding=0, dilation=1, groups=1,
               relu=True, bn=True, conv_bias=None, eps=1e-5):
    """PyTorch-equivalent BasicConv forward.

    x_nchw: (N, Cin, H, W)
    weight: (Cout, Cin, KH, KW)   (PyTorch Conv2d weight layout)
    returns (N, Cout, H_out, W_out) float32
    """
    # TODO(synk): grouped convolution (groups > 1) not implemented.
    assert groups == 1, "only groups=1 is supported"

    N, Cin, H, W = x_nchw.shape
    Cout, _, KH, KW = weight.shape
    s, d, p = stride, dilation, padding

    Ho = (H + 2 * p - d * (KH - 1) - 1) // s + 1
    Wo = (W + 2 * p - d * (KW - 1) - 1) // s + 1
    Hp, Wp = H + 2 * p, W + 2 * p

    # Channel round-up: Cin to 16 (bf16 sublane packing of the GEMM rhs /
    # contraction dim), Cout to 8 (f32 accumulator sublanes).
    Cin_p = -(-Cin // 16) * 16
    Cout_p = -(-Cout // 8) * 8

    Lout = Ho * Wp                                     # kernel output row-major length
    tap_offsets = [d * (kh * Wp + kw) for kh in range(KH) for kw in range(KW)]

    # Bottom halo so every tap's flat slice stays in bounds.
    needed = tap_offsets[-1] + s * (Lout - 1) + 1
    extra = max(0, needed - Hp * Wp)
    extra_rows = -(-extra // Wp)
    Lp = (Hp + extra_rows) * Wp

    # --- activation: one bf16 pad + FREE trailing-dim reshape (no im2col) ---
    x_flat = jnp.pad(
        x_nchw.astype(jnp.bfloat16),
        ((0, 0), (0, Cin_p - Cin), (p, p + extra_rows), (p, p)),
    ).reshape(N, Cin_p, Lp)

    # --- fold BatchNorm (inference) into weight / bias -----------------------
    if bn:
        scale = bn_gamma.astype(jnp.float32) / jnp.sqrt(bn_var.astype(jnp.float32) + eps)
        bias = bn_beta.astype(jnp.float32) - bn_mean.astype(jnp.float32) * scale
    else:
        scale = jnp.ones((Cout,), jnp.float32)
        bias = jnp.zeros((Cout,), jnp.float32)
    if conv_bias is not None:
        bias = bias + conv_bias.astype(jnp.float32) * scale

    w_f32 = weight.astype(jnp.float32) * scale[:, None, None, None]   # (Cout,Cin,KH,KW)
    w_taps = jnp.transpose(w_f32, (2, 3, 0, 1)).reshape(KH * KW, Cout, Cin)
    w_taps = jnp.pad(w_taps, ((0, 0), (0, Cout_p - Cout), (0, Cin_p - Cin)))
    w_taps = w_taps.astype(jnp.bfloat16)                              # (T, Cout_p, Cin_p)
    bias2d = jnp.pad(bias.reshape(Cout, 1), ((0, Cout_p - Cout), (0, 0)))  # (Cout_p, 1) f32

    kernel = functools.partial(
        _conv_bn_relu_kernel,
        tap_offsets=tuple(tap_offsets), stride=s, relu=relu)

    # VMEM budget: resident weight/bias + double-buffered x / out blocks.
    # Capped at 64 MiB so the limit is valid on v7x as well as v5e/v6e.
    est = (2 * Cin_p * Lp * 2 + 2 * Cout_p * Lout * 4
           + KH * KW * Cout_p * Cin_p * 2 + Cout_p * 4 + (1 << 20))
    vmem_limit = int(min(max(est, 32 << 20), 64 << 20))
    # TODO(synk): for very large Cin/H/W add a K / spatial grid axis so a block
    # never exceeds the 64 MiB v7x VMEM; unnecessary at BasicConv shapes.

    out_flat = pl.pallas_call(
        kernel,
        out_shape=jax.ShapeDtypeStruct((N, Cout_p, Lout), jnp.float32),
        grid=(N,),
        in_specs=[
            pl.BlockSpec((KH * KW, Cout_p, Cin_p), lambda n: (0, 0, 0)),  # weight (resident)
            pl.BlockSpec((Cout_p, 1), lambda n: (0, 0)),                  # bias   (resident)
            pl.BlockSpec((None, Cin_p, Lp), lambda n: (n, 0, 0)),         # one sample
        ],
        out_specs=pl.BlockSpec((None, Cout_p, Lout), lambda n: (n, 0, 0)),
        compiler_params=pltpu.CompilerParams(
            dimension_semantics=("parallel",),
            vmem_limit_bytes=vmem_limit),
    )(w_taps, bias2d, x_flat)

    # (N, Cout_p, Ho*Wp) -> (N, Cout, Ho, Wo): free reshape + one cheap slice
    # (drops the padded channels and the Wp-Wo garbage columns per row).
    out = out_flat.reshape(N, Cout_p, Ho, Wp)[:, :Cout, :, :Wo]
    return out


def _reference(x_nchw, weight, bn_gamma, bn_beta, bn_mean, bn_var,
               *, stride, padding, dilation, relu, eps=1e-5):
    y = jax.lax.conv_general_dilated(
        x_nchw.astype(jnp.float32), weight.astype(jnp.float32),
        window_strides=(stride, stride),
        padding=((padding, padding), (padding, padding)),
        rhs_dilation=(dilation, dilation),
        dimension_numbers=("NCHW", "OIHW", "NCHW"))
    scale = (bn_gamma / jnp.sqrt(bn_var + eps)).reshape(1, -1, 1, 1)
    bias = (bn_beta - bn_mean * bn_gamma / jnp.sqrt(bn_var + eps)
            ).reshape(1, -1, 1, 1)
    y = y * scale + bias
    if relu:
        y = jnp.maximum(y, 0.0)
    return y


if __name__ == "__main__":
    key = jax.random.PRNGKey(0)
    k_x, k_w, k_g, k_b, k_m, k_v = jax.random.split(key, 6)

    # BasicConv(in_planes=4, out_planes=8, kernel_size=3, stride=1, padding=1)
    N, Cin, H, W = 2, 4, 16, 16
    Cout, KH, KW = 8, 3, 3
    stride, padding, dilation = 1, 1, 1

    x = jax.random.normal(k_x, (N, Cin, H, W), dtype=jnp.float32)
    weight = jax.random.normal(k_w, (Cout, Cin, KH, KW), dtype=jnp.float32) * 0.1
    bn_gamma = 1.0 + 0.1 * jax.random.normal(k_g, (Cout,), dtype=jnp.float32)
    bn_beta = 0.1 * jax.random.normal(k_b, (Cout,), dtype=jnp.float32)
    bn_mean = 0.1 * jax.random.normal(k_m, (Cout,), dtype=jnp.float32)
    bn_var = jnp.abs(jax.random.normal(k_v, (Cout,), dtype=jnp.float32)) + 0.5

    out = basic_conv(x, weight, bn_gamma, bn_beta, bn_mean, bn_var,
                     stride=stride, padding=padding, dilation=dilation,
                     relu=True, bn=True)
    out = jax.block_until_ready(out)

    ref = _reference(x, weight, bn_gamma, bn_beta, bn_mean, bn_var,
                     stride=stride, padding=padding, dilation=dilation,
                     relu=True)
    assert out.shape == (N, Cout, H, W)
    # bf16 MXU operands with f32 accumulation -> loose tolerance vs f32 ref.
    assert jnp.allclose(out, ref, atol=2e-2, rtol=2e-2), float(
        jnp.max(jnp.abs(out - ref)))

    print("KERNEL_OK")
</pallas_src>

<mosaic_0001>
module attributes {stable_mosaic.version = 11 : i64} {
  func.func @_conv_bn_relu_kernel(%arg0: i32, %arg1: memref<9x8x16xbf16, #tpu.memory_space<vmem>>, %arg2: memref<8x1xf32, #tpu.memory_space<vmem>>, %arg3: memref<1x16x342xbf16, #tpu.memory_space<vmem>>, %arg4: memref<1x8x288xf32, #tpu.memory_space<vmem>>) attributes {dimension_semantics = [#tpu.dimension_semantics<parallel>], iteration_bounds = array<i64: 2>, scalar_prefetch = 0 : i64, scratch_operands = 0 : i64, tpu.core_type = #tpu.core_type<tc>, window_params = [{pipeline_mode = #tpu.pipeline_mode<synchronous>, transform_indices = @transform_0, window_bounds = array<i64: 9, 8, 16>}, {pipeline_mode = #tpu.pipeline_mode<synchronous>, transform_indices = @transform_1, window_bounds = array<i64: 8, 1>}, {transform_indices = @transform_2, window_bounds = array<i64: 1, 16, 342>}, {transform_indices = @transform_3, window_bounds = array<i64: 1, 8, 288>}]} {
    %cst = arith.constant 0.000000e+00 : f32
    %0 = vector.broadcast %cst : f32 to vector<8x288xf32>
    %c0 = arith.constant 0 : index
    %c0_0 = arith.constant 0 : index
    %c0_1 = arith.constant 0 : index
    %1 = vector.load %arg3[%c0, %c0_0, %c0_1] : memref<1x16x342xbf16, #tpu.memory_space<vmem>>, vector<1x16x288xbf16>
    %2 = vector.shape_cast %1 : vector<1x16x288xbf16> to vector<16x288xbf16>
    %c0_2 = arith.constant 0 : index
    %c0_3 = arith.constant 0 : index
    %c0_4 = arith.constant 0 : index
    %3 = vector.load %arg1[%c0_2, %c0_3, %c0_4] : memref<9x8x16xbf16, #tpu.memory_space<vmem>>, vector<1x8x16xbf16>
    %4 = vector.shape_cast %3 : vector<1x8x16xbf16> to vector<8x16xbf16>
    %cst_5 = arith.constant dense<0.000000e+00> : vector<8x288xf32>
    %5 = tpu.matmul %4, %2, %cst_5 {dimension_numbers = #tpu.dot_dimension_numbers<[1], [0], [0], [1], [0, 0, 1, 1], [], []>} : vector<8x16xbf16>, vector<16x288xbf16>, vector<8x288xf32> -> vector<8x288xf32>
    %6 = arith.addf %0, %5 : vector<8x288xf32>
    %c0_6 = arith.constant 0 : index
    %c0_7 = arith.constant 0 : index
    %c1 = arith.constant 1 : index
    %7 = vector.load %arg3[%c0_6, %c0_7, %c1] : memref<1x16x342xbf16, #tpu.memory_space<vmem>>, vector<1x16x288xbf16>
    %8 = vector.shape_cast %7 : vector<1x16x288xbf16> to vector<16x288xbf16>
    %c1_8 = arith.constant 1 : index
    %c0_9 = arith.constant 0 : index
    %c0_10 = arith.constant 0 : index
    %9 = vector.load %arg1[%c1_8, %c0_9, %c0_10] : memref<9x8x16xbf16, #tpu.memory_space<vmem>>, vector<1x8x16xbf16>
    %10 = vector.shape_cast %9 : vector<1x8x16xbf16> to vector<8x16xbf16>
    %cst_11 = arith.constant dense<0.000000e+00> : vector<8x288xf32>
    %11 = tpu.matmul %10, %8, %cst_11 {dimension_numbers = #tpu.dot_dimension_numbers<[1], [0], [0], [1], [0, 0, 1, 1], [], []>} : vector<8x16xbf16>, vector<16x288xbf16>, vector<8x288xf32> -> vector<8x288xf32>
    %12 = arith.addf %6, %11 : vector<8x288xf32>
    %c0_12 = arith.constant 0 : index
    %c0_13 = arith.constant 0 : index
    %c2 = arith.constant 2 : index
    %13 = vector.load %arg3[%c0_12, %c0_13, %c2] : memref<1x16x342xbf16, #tpu.memory_space<vmem>>, vector<1x16x288xbf16>
    %14 = vector.shape_cast %13 : vector<1x16x288xbf16> to vector<16x288xbf16>
    %c2_14 = arith.constant 2 : index
    %c0_15 = arith.constant 0 : index
    %c0_16 = arith.constant 0 : index
    %15 = vector.load %arg1[%c2_14, %c0_15, %c0_16] : memref<9x8x16xbf16, #tpu.memory_space<vmem>>, vector<1x8x16xbf16>
    %16 = vector.shape_cast %15 : vector<1x8x16xbf16> to vector<8x16xbf16>
    %cst_17 = arith.constant dense<0.000000e+00> : vector<8x288xf32>
    %17 = tpu.matmul %16, %14, %cst_17 {dimension_numbers = #tpu.dot_dimension_numbers<[1], [0], [0], [1], [0, 0, 1, 1], [], []>} : vector<8x16xbf16>, vector<16x288xbf16>, vector<8x288xf32> -> vector<8x288xf32>
    %18 = arith.addf %12, %17 : vector<8x288xf32>
    %c0_18 = arith.constant 0 : index
    %c0_19 = arith.constant 0 : index
    %c18 = arith.constant 18 : index
    %19 = vector.load %arg3[%c0_18, %c0_19, %c18] : memref<1x16x342xbf16, #tpu.memory_space<vmem>>, vector<1x16x288xbf16>
    %20 = vector.shape_cast %19 : vector<1x16x288xbf16> to vector<16x288xbf16>
    %c3 = arith.constant 3 : index
    %c0_20 = arith.constant 0 : index
    %c0_21 = arith.constant 0 : index
    %21 = vector.load %arg1[%c3, %c0_20, %c0_21] : memref<9x8x16xbf16, #tpu.memory_space<vmem>>, vector<1x8x16xbf16>
    %22 = vector.shape_cast %21 : vector<1x8x16xbf16> to vector<8x16xbf16>
    %cst_22 = arith.constant dense<0.000000e+00> : vector<8x288xf32>
    %23 = tpu.matmul %22, %20, %cst_22 {dimension_numbers = #tpu.dot_dimension_numbers<[1], [0], [0], [1], [0, 0, 1, 1], [], []>} : vector<8x16xbf16>, vector<16x288xbf16>, vector<8x288xf32> -> vector<8x288xf32>
    %24 = arith.addf %18, %23 : vector<8x288xf32>
    %c0_23 = arith.constant 0 : index
    %c0_24 = arith.constant 0 : index
    %c19 = arith.constant 19 : index
    %25 = vector.load %arg3[%c0_23, %c0_24, %c19] : memref<1x16x342xbf16, #tpu.memory_space<vmem>>, vector<1x16x288xbf16>
    %26 = vector.shape_cast %25 : vector<1x16x288xbf16> to vector<16x288xbf16>
    %c4 = arith.constant 4 : index
    %c0_25 = arith.constant 0 : index
    %c0_26 = arith.constant 0 : index
    %27 = vector.load %arg1[%c4, %c0_25, %c0_26] : memref<9x8x16xbf16, #tpu.memory_space<vmem>>, vector<1x8x16xbf16>
    %28 = vector.shape_cast %27 : vector<1x8x16xbf16> to vector<8x16xbf16>
    %cst_27 = arith.constant dense<0.000000e+00> : vector<8x288xf32>
    %29 = tpu.matmul %28, %26, %cst_27 {dimension_numbers = #tpu.dot_dimension_numbers<[1], [0], [0], [1], [0, 0, 1, 1], [], []>} : vector<8x16xbf16>, vector<16x288xbf16>, vector<8x288xf32> -> vector<8x288xf32>
    %30 = arith.addf %24, %29 : vector<8x288xf32>
    %c0_28 = arith.constant 0 : index
    %c0_29 = arith.constant 0 : index
    %c20 = arith.constant 20 : index
    %31 = vector.load %arg3[%c0_28, %c0_29, %c20] : memref<1x16x342xbf16, #tpu.memory_space<vmem>>, vector<1x16x288xbf16>
    %32 = vector.shape_cast %31 : vector<1x16x288xbf16> to vector<16x288xbf16>
    %c5 = arith.constant 5 : index
    %c0_30 = arith.constant 0 : index
    %c0_31 = arith.constant 0 : index
    %33 = vector.load %arg1[%c5, %c0_30, %c0_31] : memref<9x8x16xbf16, #tpu.memory_space<vmem>>, vector<1x8x16xbf16>
    %34 = vector.shape_cast %33 : vector<1x8x16xbf16> to vector<8x16xbf16>
    %cst_32 = arith.constant dense<0.000000e+00> : vector<8x288xf32>
    %35 = tpu.matmul %34, %32, %cst_32 {dimension_numbers = #tpu.dot_dimension_numbers<[1], [0], [0], [1], [0, 0, 1, 1], [], []>} : vector<8x16xbf16>, vector<16x288xbf16>, vector<8x288xf32> -> vector<8x288xf32>
    %36 = arith.addf %30, %35 : vector<8x288xf32>
    %c0_33 = arith.constant 0 : index
    %c0_34 = arith.constant 0 : index
    %c36 = arith.constant 36 : index
    %37 = vector.load %arg3[%c0_33, %c0_34, %c36] : memref<1x16x342xbf16, #tpu.memory_space<vmem>>, vector<1x16x288xbf16>
    %38 = vector.shape_cast %37 : vector<1x16x288xbf16> to vector<16x288xbf16>
    %c6 = arith.constant 6 : index
    %c0_35 = arith.constant 0 : index
    %c0_36 = arith.constant 0 : index
    %39 = vector.load %arg1[%c6, %c0_35, %c0_36] : memref<9x8x16xbf16, #tpu.memory_space<vmem>>, vector<1x8x16xbf16>
    %40 = vector.shape_cast %39 : vector<1x8x16xbf16> to vector<8x16xbf16>
    %cst_37 = arith.constant dense<0.000000e+00> : vector<8x288xf32>
    %41 = tpu.matmul %40, %38, %cst_37 {dimension_numbers = #tpu.dot_dimension_numbers<[1], [0], [0], [1], [0, 0, 1, 1], [], []>} : vector<8x16xbf16>, vector<16x288xbf16>, vector<8x288xf32> -> vector<8x288xf32>
    %42 = arith.addf %36, %41 : vector<8x288xf32>
    %c0_38 = arith.constant 0 : index
    %c0_39 = arith.constant 0 : index
    %c37 = arith.constant 37 : index
    %43 = vector.load %arg3[%c0_38, %c0_39, %c37] : memref<1x16x342xbf16, #tpu.memory_space<vmem>>, vector<1x16x288xbf16>
    %44 = vector.shape_cast %43 : vector<1x16x288xbf16> to vector<16x288xbf16>
    %c7 = arith.constant 7 : index
    %c0_40 = arith.constant 0 : index
    %c0_41 = arith.constant 0 : index
    %45 = vector.load %arg1[%c7, %c0_40, %c0_41] : memref<9x8x16xbf16, #tpu.memory_space<vmem>>, vector<1x8x16xbf16>
    %46 = vector.shape_cast %45 : vector<1x8x16xbf16> to vector<8x16xbf16>
    %cst_42 = arith.constant dense<0.000000e+00> : vector<8x288xf32>
    %47 = tpu.matmul %46, %44, %cst_42 {dimension_numbers = #tpu.dot_dimension_numbers<[1], [0], [0], [1], [0, 0, 1, 1], [], []>} : vector<8x16xbf16>, vector<16x288xbf16>, vector<8x288xf32> -> vector<8x288xf32>
    %48 = arith.addf %42, %47 : vector<8x288xf32>
    %c0_43 = arith.constant 0 : index
    %c0_44 = arith.constant 0 : index
    %c38 = arith.constant 38 : index
    %49 = vector.load %arg3[%c0_43, %c0_44, %c38] : memref<1x16x342xbf16, #tpu.memory_space<vmem>>, vector<1x16x288xbf16>
    %50 = vector.shape_cast %49 : vector<1x16x288xbf16> to vector<16x288xbf16>
    %c8 = arith.constant 8 : index
    %c0_45 = arith.constant 0 : index
    %c0_46 = arith.constant 0 : index
    %51 = vector.load %arg1[%c8, %c0_45, %c0_46] : memref<9x8x16xbf16, #tpu.memory_space<vmem>>, vector<1x8x16xbf16>
    %52 = vector.shape_cast %51 : vector<1x8x16xbf16> to vector<8x16xbf16>
    %cst_47 = arith.constant dense<0.000000e+00> : vector<8x288xf32>
    %53 = tpu.matmul %52, %50, %cst_47 {dimension_numbers = #tpu.dot_dimension_numbers<[1], [0], [0], [1], [0, 0, 1, 1], [], []>} : vector<8x16xbf16>, vector<16x288xbf16>, vector<8x288xf32> -> vector<8x288xf32>
    %54 = arith.addf %48, %53 : vector<8x288xf32>
    %c0_48 = arith.constant 0 : index
    %c0_49 = arith.constant 0 : index
    %55 = vector.load %arg2[%c0_48, %c0_49] : memref<8x1xf32, #tpu.memory_space<vmem>>, vector<8x1xf32>
    %56 = vector.broadcast %55 : vector<8x1xf32> to vector<8x288xf32>
    %57 = arith.addf %54, %56 : vector<8x288xf32>
    %cst_50 = arith.constant 0.000000e+00 : f32
    %58 = vector.broadcast %cst_50 : f32 to vector<8x288xf32>
    %59 = arith.maximumf %57, %58 : vector<8x288xf32>
    %c0_51 = arith.constant 0 : index
    %c0_52 = arith.constant 0 : index
    %c0_53 = arith.constant 0 : index
    %60 = vector.load %arg4[%c0_51, %c0_52, %c0_53] : memref<1x8x288xf32, #tpu.memory_space<vmem>>, vector<1x8x288xf32>
    %61 = vector.shape_cast %60 : vector<1x8x288xf32> to vector<8x288xf32>
    %62 = vector.shape_cast %59 : vector<8x288xf32> to vector<1x8x288xf32>
    tpu.vector_store %arg4[%c0_51, %c0_52, %c0_53], %62 {strides = array<i32>} : memref<1x8x288xf32, #tpu.memory_space<vmem>>, vector<1x8x288xf32>,
    return
  }
  func.func @transform_0(%arg0: i32) -> (i32, i32, i32) {
    %c0_i32 = arith.constant 0 : i32
    %c0_i32_0 = arith.constant 0 : i32
    %c0_i32_1 = arith.constant 0 : i32
    %c0_i32_2 = arith.constant 0 : i32
    return %c0_i32, %c0_i32_0, %c0_i32_1 : i32, i32, i32
  }
  func.func @transform_1(%arg0: i32) -> (i32, i32) {
    %c0_i32 = arith.constant 0 : i32
    %c0_i32_0 = arith.constant 0 : i32
    %c0_i32_1 = arith.constant 0 : i32
    return %c0_i32, %c0_i32_0 : i32, i32
  }
  func.func @transform_2(%arg0: i32) -> (i32, i32, i32) {
    %c0_i32 = arith.constant 0 : i32
    %c0_i32_0 = arith.constant 0 : i32
    %c0_i32_1 = arith.constant 0 : i32
    return %arg0, %c0_i32, %c0_i32_0 : i32, i32, i32
  }
  func.func @transform_3(%arg0: i32) -> (i32, i32, i32) {
    %c0_i32 = arith.constant 0 : i32
    %c0_i32_0 = arith.constant 0 : i32
    %c0_i32_1 = arith.constant 0 : i32
    return %arg0, %c0_i32, %c0_i32_0 : i32, i32, i32
  }
}

</mosaic_0001>

<bundles_post_ra>
// kernel: tpu_custom_call.1
= control target key start
LH: loop header
LB: loop body
LE: loop exit
PB: predicated region body
PF: predicated region fallthrough
CT: control target
= control target key end

     0   :  { %8 = vsyncpa [#allocation3], 0  ;;  %s1331_s0 = inlined_call_operand.hbm [shape: bf16[9,8,16], index: 0, kind: input, shape index: {}]   ;;  %s1332_s1 = inlined_call_operand.vmem [shape: f32[8,1], index: 1, kind: input, shape index: {}]   ;;  %s1333_s2 = inlined_call_operand.hbm [shape: bf16[2,16,342], index: 2, kind: input, shape index: {}]   ;;  %s1334_s3 = inlined_call_operand.hbm [shape: f32[2,8,288], index: 3, kind: output, shape index: {}]  }
   0x1   :  { %9 = vsyncpa [#allocation6], 0 }
   0x2   :  { %11 = vsyncpa [#allocation6 + $0x1], 0 }
   0x3   :  { %12 = vsyncpa [#allocation4], 0 }
   0x4   :  { %14 = vsyncpa [#allocation4 + $0x1], 0  ;;  %s1150_s12 = smov 0   ;;  %s1152_s13 = smov 0  }
   0x5   :  { %s1154_s14 = smov 0   ;;  %s1156_s15 = smov 0  }
   0x6 LB: > { %s1171_s16 = sadd.s32 4294967295, %s1114_s15   ;;  %s857_s17 = sadd.s32 4294967294, %s1114_s15   ;;  %s1114_s15 = sphi %s1156_s15, %s1344_s15   ;;  %s1110_s14 = sphi %s1154_s14, %s1343_s14   ;;  %s1106_s13 = sphi %s1152_s13, %s1342_s13   ;;  %s1102_s12 = sphi %s1150_s12, %s1341_s12  }
   0x7   : > { %p82_p0 = scmp.ne.s32.totalorder %s1106_s13, %s1102_s12  ;;  %p83_p1 = scmp.eq.s32.totalorder %s1171_s16, 0 }
   0x8   : > { %p106_p2 = scmp.eq.s32.totalorder %s1171_s16, 1  ;;  %p112_p3 = scmp.eq.s32.totalorder %s857_s17, 1 }
   0x9   : > { %p1180_p4 = por %p83_p1, %p82_p0  ;;  %p858_p5 = scmp.ge.s32.totalorder %s1114_s15, 1 }
   0xa   : > { %p1185_p6 = por %p112_p3, %p82_p0  ;;  %p119_p7 = scmp.lt.s32.totalorder %s1114_s15, 3 }
   0xb   : > { %s130_s22 = sshll.u32 %s1331_s0, 4  ;;  %s1116_s24 = smov [#allocation2]   ;;  %s131_s22 = int_to_ptr.hbm [resolvable:$true] %s130_s22 }
   0xc   : > { %p1193_p8 = pnand %p858_p5, %p119_p7  ;;  %s132_s25 = sshll.u32 %s1116_s24, 4  ;;  %s133_s25 = int_to_ptr.vmem [resolvable:$true] %s132_s25 }
   0xd   : > { %s1203_s26 = sadd.s32 1, %s1114_s15   ;;  %s1117_s27 = smov 64  }
   0xe   : > { %p921_p9 = pneg %p1193_p8  ;;  %s1118_s28 = smov 4  }
   0xf   : > { %s66_s29 = ssub.s32 %s1114_s15, %s1203_s26  ;;  %s69_s30 = sadd.s32 1, %s1110_s14 }
  0x10   : > { %p922_p10 = pnand %p921_p9, %p83_p1  ;;  %p67_p12 = scmp.eq.s32.totalorder %s66_s29, 0 }
  0x11   : > { %p76_p13 = scmp.ne.s32.totalorder %s1110_s14, %s1106_s13  ;;  %p77_p0 = scmp.eq.s32.totalorder %s1114_s15, 0 }
  0x12   : > { %924 = dma.hbm_to_vmem [thread:$0]  (!%p922_p10), %s131_s22, 576, %s133_s25, [#allocation3], %s1117_s27, %s1117_s27, %s1118_s28  }
  0x13   : > { %p934_p3 = scmp.lt.s32.totalorder %s1114_s15, 2  ;;  %p78_p5 = por %p77_p0, %p76_p13 }
  0x14   : > { %s1213_s4 = scalar_select %p67_p12, %s1110_s14, %s69_s30  }
  0x15   : > { %p1217_p7 = por %p106_p2, %p76_p13  ;;  %s149_s6 = sand.u32 1, %s1110_s14  }
  0x16   : > { %s910_s7 = smul.u32 24, %s1114_s15  ;;  %p1226_p9 = pnand %p934_p3, %p78_p5 }
  0x17   : > { %s909_s8 = smul.u32 24, %s149_s6  ;;  %s150_s24 = scalar_lea.sflag [#allocation6], %s149_s6 }
  0x18   : > { %s158_s11 = scalar_lea.hbm %s1333_s2, %s910_s7  ;;  %p1018_p10 = pneg %p1226_p9 }
  0x19   : > { %s159_s20 = sshll.u32 %s158_s11, 4  ;;  %s153_s21 = scalar_lea.vmem [#allocation5], %s909_s8  ;;  %s160_s20 = int_to_ptr.hbm [resolvable:$true] %s159_s20 }
  0x1a   : > { %s161_s22 = sshll.u32 %s153_s21, 4  ;;  %s1014_s25 = sshra.s32 %s160_s20, 4  ;;  %s162_s22 = int_to_ptr.vmem [resolvable:$true] %s161_s22  ;;  %s1015_s25 = int_to_ptr.hbm [resolvable:$true] %s1014_s25 }
  0x1b   : > { %s1016_s27 = scalar_lea.hbm %s1015_s25, 24  ;;  %s1021_s30 = scalar_lea.hbm %s1333_s2, 48 }
  0x1c   : > { %p1017_p2 = scmp.ne.s32.totalorder %s1015_s25, %s1016_s27  ;;  %p1022_p0 = scmp.lt.s32.totalorder %s1015_s25, %s1333_s2 }
  0x1d   : > { %p1023_p3 = scmp.lt.s32.totalorder %s1021_s30, %s1016_s27 }
  0x1e   : > { %p1019_p12 = pnand %p1018_p10, %p1017_p2 }
  0x1f   : > { %p1024_p5 = por %p1023_p3, %p1022_p0 }
  0x20   : > { %p1020_p13 = pneg %p1019_p12 }
  0x22   : > { %p1025_p11 = pnand %p1024_p5, %p1020_p13 }
  0x24   : > { %1028 = shalt.err (!%p1025_p11)
}
  0x25   : > { %s1119_s6 = smov 192   ;;  %s1120_s8 = smov 12  }
  0x26   : > { %928 = dma.hbm_to_vmem [thread:$0]  (!%p1226_p9), %s160_s20, 384, %s162_s22, %s150_s24, %s1119_s6, %s1119_s6, %s1120_s8  }
  0x27   : > { %173 = sbr.rel (%p1193_p8) target bundleno = 412 (0x19c), region = 32 }
  0x2c   : > { %1089 = dma.done.wait (%p83_p1), [#allocation3], 576  }
  0x2d   : > { %1091 = vsyncadd (%p83_p1), [#allocation3], 4294966720  ;;  %s1247_s10 = sand.u32 1, %s1106_s13  }
  0x2e   : > { %s911_s11 = smul.u32 24, %s1247_s10  ;;  %s181_s21 = scalar_lea.sflag [#allocation6], %s1247_s10 }
  0x30   : > { %s184_s17 = scalar_lea.vmem [#allocation5], %s911_s11 }
  0x31   : > { %1093 = dma.done.wait (%p1180_p4), %s181_s21, 384  }
  0x32   : > { %1095 = vsyncadd (%p1180_p4), %s181_s21, 4294966912  ;;  %v874_v0 = vld [vmem:[%s184_s17 + $0x8] sm:$0xf]  ;;  %v908_v1 = vld [vmem:[%s184_s17 + $0x10] sm:$0xf0]  ;;  %s1121_s23 = smov 127  }
  0x33   : > { %v906_v2 = vld [vmem:[%s184_s17 + $0x4] sm:$0xf]  ;;  %v875_v3 = vor.u32 %v908_v1, %v874_v0  ;;  %v868_v4 = vld [vmem:[%s184_s17 + $0xc] sm:$0xf0]  ;;  %v866_v5 = vld [vmem:[%s184_s17] sm:$0xf] }
  0x34   : > { %v907_v6 = vld [vmem:[%s184_s17 + $0x8] sm:$0xf0]  ;;  %v871_v7 = vor.u32 %v906_v2, %v868_v4  ;;  %s1122_s20 = smov 126   ;;  %s1123_s18 = smov 110   ;;  %vm241_vm0 = vcmask 130048   ;;  %vm337_vm1 = vcmask 1031168  }
  0x35   : > { %233 = vrot.lane.b32.xlu0 %v875_v3, %s1121_s23  ;;  %v867_v8 = vor.u32 %v907_v6, %v866_v5  ;;  %s1124_s22 = smov 109   ;;  %s1125_s24 = smov 108   ;;  %v213_v9 = vld [vmem:[#allocation2] sm:$0xf]  ;;  %v1259_v13 = vld [vmem:[#allocation2 + $0x8] sm:$0xf] }
  0x36   : > { %231 = vrot.lane.b32.xlu1 %v871_v7, %s1121_s23  ;;  %333 = vrot.lane.b32.xlu2 %v871_v7, %s1122_s20  ;;  %s1126_s25 = smov 92   ;;  %s1127_s27 = smov 91   ;;  %vm235_vm2 = vcmask 1039360   ;;  %v215_v16 = vld [vmem:[#allocation2 + $0x4] sm:$0xf]  ;;  %vm396_vm3 = vcmask 900096  }
  0x37   : > { %297 = vmatpush.bf16.msra.mxu3 %v867_v8  ;;  %s1128_s28 = smov 90   ;;  %v389_v27 = vld [vmem:[#allocation2 + $0xc] sm:$0xf]  ;;  %vm455_vm4 = vcmask 891904   ;;  %vm514_vm5 = vcmask 883712   ;;  %vm573_vm6 = vcmask 752640  }
  0x38   : > { %v507_v37 = vld [vmem:[#allocation2 + $0x14] sm:$0xf]  ;;  %vm632_vm7 = vcmask 744448   ;;  %v448_v45 = vld [vmem:[#allocation2 + $0x10] sm:$0xf]  ;;  %vm691_vm8 = vcmask 736256  }
  0x39   : > { %v566_v50 = vld [vmem:[#allocation2 + $0x18] sm:$0xf]  ;;  %v625_v54 = vld [vmem:[#allocation2 + $0x1c] sm:$0xf]  ;;  %v742_v57 = vld [vmem:[%s1332_s1] sm:$0xff]  ;;  %v1129_v58 = vmov 0  }
  0x3a   : > { %879 = vmatmul.msk.bf16.vlgmr.msra.gmra.mxu3 %vm241_vm0, %v213_v9  ;;  %983 = vset.pattern.permute.xlu0 %v1129_v58  ;;  %v684_v59 = vld [vmem:[#allocation2 + $0x20] sm:$0xf]  ;;  %s912_s7 = smul.u32 24, %s1171_s16  ;;  %s207_s21 = scalar_lea.vmem [#allocation7], %s911_s11  ;;  %vm756_vm9 = vcmask 261120  }
  0x3b   : > { %s772_s16 = sshll.u32 %s207_s21, 4  ;;  %s759_s11 = scalar_lea.sflag [#allocation4], %s1247_s10  ;;  %s773_s16 = int_to_ptr.vmem [resolvable:$true] %s772_s16 }
  0x3c   : > { %s770_s8 = scalar_lea.hbm %s1334_s3, %s912_s7 }
  0x3d   : > { %229 = vrot.lane.b32.xlu0 %v867_v8, %s1121_s23  ;;  %s774_s17 = sshll.u32 %s770_s8, 4  ;;  %s775_s17 = int_to_ptr.hbm [resolvable:$true] %s774_s17 }
  0x3e   : > { %331 = vrot.lane.b32.xlu1 %v867_v8, %s1122_s20  ;;  %335 = vrot.lane.b32.xlu2 %v875_v3, %s1122_s20  ;;  %s1058_s23 = sshra.s32 %s775_s17, 4  ;;  %s1059_s23 = int_to_ptr.hbm [resolvable:$true] %s1058_s23 }
  0x3f   : > { %s1060_s20 = scalar_lea.hbm %s1059_s23, 24  ;;  %p1065_p11 = scmp.lt.s32.totalorder %s1059_s23, %s1334_s3 }
  0x40   : > { %p1061_p1 = scmp.ne.s32.totalorder %s1059_s23, %s1060_s20 }
  0x42   : > { %p1062_p4 = pnand %p1061_p1, %p1217_p7 }
  0x44   : > { %p1063_p8 = pneg %p1062_p4 }
  0x45   : > { %392 = vrot.lane.b32.xlu0 %v871_v7, %s1123_s18 }
  0x46   : > { %394 = vrot.lane.b32.xlu1 %v875_v3, %s1123_s18  ;;  %390 = vrot.lane.b32.xlu2 %v867_v8, %s1123_s18 }
  0x4d   : > { %453 = vrot.lane.b32.xlu0 %v875_v3, %s1124_s22 }
  0x4e   : > { %449 = vrot.lane.b32.xlu1 %v867_v8, %s1124_s22  ;;  %451 = vrot.lane.b32.xlu2 %v871_v7, %s1124_s22 }
  0x55   : > { %508 = vrot.lane.b32.xlu0 %v867_v8, %s1125_s24 }
  0x56   : > { %510 = vrot.lane.b32.xlu1 %v871_v7, %s1125_s24  ;;  %567 = vrot.lane.b32.xlu2 %v867_v8, %s1126_s25 }
  0x5d   : > { %569 = vrot.lane.b32.xlu0 %v871_v7, %s1126_s25 }
  0x5e   : > { %512 = vrot.lane.b32.xlu1 %v875_v3, %s1125_s24  ;;  %571 = vrot.lane.b32.xlu2 %v875_v3, %s1126_s25  ;;  %s1064_s24 = scalar_lea.hbm %s1334_s3, 48 }
  0x5f   : > { %p1066_p9 = scmp.lt.s32.totalorder %s1064_s24, %s1060_s20 }
  0x61   : > { %p1067_p2 = por %p1066_p9, %p1065_p11 }
  0x63   : > { %p1068_p10 = pnand %p1067_p2, %p1063_p8 }
  0x65   : > { %628 = vrot.lane.b32.xlu0 %v871_v7, %s1127_s27 }
  0x66   : > { %630 = vrot.lane.b32.xlu1 %v875_v3, %s1127_s27  ;;  %626 = vrot.lane.b32.xlu2 %v867_v8, %s1127_s27 }
  0x6d   : > { %689 = vrot.lane.b32.xlu0 %v875_v3, %s1128_s28 }
  0x6e   : > { %685 = vrot.lane.b32.xlu1 %v867_v8, %s1128_s28  ;;  %687 = vrot.lane.b32.xlu2 %v871_v7, %s1128_s28 }
  0x75   : > { %745 = vperm.xlu0 %983, %v742_v57  }
  0x90   : > { %v334_v10 = vpop.permute.xlu2 %333 }
  0x98   : > { %v336_v11 = vpop.permute.xlu2 %335 }
  0x99   : > { %v339_v12 = vsel %vm337_vm1, %v334_v10, %v336_v11 }
  0x9a   : > { %366 = vmatpush.bf16.msrb.mxu3 %v339_v12 }
  0x9d   : > { %883 = vmatmul.msk.bf16.vlgmr.msrb.gmra.mxu3 %vm241_vm0, %v1259_v13 }
  0xa0   : > { %v391_v22 = vpop.permute.xlu2 %390 }
  0xa7   : > { %v234_v14 = vpop.permute.xlu0 %233 }
  0xa8   : > { %v232_v15 = vpop.permute.xlu1 %231  ;;  %278 = vmatpush.bf16.msra.mxu2 %v234_v14  ;;  %v452_v28 = vpop.permute.xlu2 %451 }
  0xa9   : > { %v237_v17 = vsel %vm235_vm2, %v232_v15, %v234_v14 }
  0xaa   : > { %265 = vmatpush.bf16.msra.mxu1 %v237_v17 }
  0xab   : > { %878 = vmatmul.msk.bf16.vlgmr.msra.gmra.mxu2 %vm241_vm0, %v215_v16 }
  0xad   : > { %877 = vmatmul.msk.bf16.vlgmr.msra.gmra.mxu1 %vm241_vm0, %v215_v16 }
  0xae   : > { %323 = vmatpush.bf16.msrb.mxu1 %v875_v3 }
  0xaf   : > { %v230_v18 = vpop.permute.xlu0 %229 }
  0xb0   : > { %v332_v19 = vpop.permute.xlu1 %331  ;;  %v236_v20 = vsel %vm235_vm2, %v230_v18, %v232_v15  ;;  %v568_v33 = vpop.permute.xlu2 %567 }
  0xb1   : > { %252 = vmatpush.bf16.msra.mxu0 %v236_v20  ;;  %v338_v21 = vsel %vm337_vm1, %v332_v19, %v334_v10 }
  0xb2   : > { %353 = vmatpush.bf16.msrb.mxu2 %v338_v21 }
  0xb4   : > { %876 = vmatmul.msk.bf16.vlgmr.msra.gmra.mxu0 %vm241_vm0, %v215_v16 }
  0xb5   : > { %310 = vmatpush.bf16.msrb.mxu0 %v871_v7 }
  0xb7   : > { %v393_v23 = vpop.permute.xlu0 %392 }
  0xb8   : > { %v397_v24 = vsel %vm396_vm3, %v391_v22, %v393_v23  ;;  %v395_v25 = vpop.permute.xlu1 %394  ;;  %v572_v38 = vpop.permute.xlu2 %571 }
  0xb9   : > { %379 = vmatpush.bf16.msra.mxu0 %v336_v11  ;;  %v398_v26 = vsel %vm396_vm3, %v393_v23, %v395_v25  ;;  %438 = vmatpush.bf16.msra.mxu3 %v395_v25 }
  0xba   : > { %412 = vmatpush.bf16.msra.mxu1 %v397_v24  ;;  %425 = vmatpush.bf16.msra.mxu2 %v398_v26 }
  0xbb   : > { %882 = vmatmul.msk.bf16.vlgmr.msrb.gmra.mxu2 %vm241_vm0, %v1259_v13 }
  0xbc   : > { %887 = vmatmul.msk.bf16.vlgmr.msra.gmra.mxu3 %vm241_vm0, %v389_v27 }
  0xbd   : > { %881 = vmatmul.msk.bf16.vlgmr.msrb.gmra.mxu1 %vm241_vm0, %v213_v9  ;;  %v299_v60 = vpop.f32.mrf.mxu3 }
  0xbf   : > { %v454_v29 = vpop.permute.xlu0 %453 }
  0xc0   : > { %v450_v30 = vpop.permute.xlu1 %449  ;;  %v457_v31 = vsel %vm455_vm4, %v452_v28, %v454_v29  ;;  %497 = vmatpush.bf16.msrb.mxu2 %v454_v29  ;;  %v627_v46 = vpop.permute.xlu2 %626 }
  0xc1   : > { %484 = vmatpush.bf16.msrb.mxu1 %v457_v31  ;;  %v456_v32 = vsel %vm455_vm4, %v450_v30, %v452_v28 }
  0xc4   : > { %880 = vmatmul.msk.bf16.vlgmr.msrb.gmra.mxu0 %vm241_vm0, %v213_v9 }
  0xc5   : > { %471 = vmatpush.bf16.msrb.mxu0 %v456_v32  ;;  %v301_v61 = vpop.f32.mrf.mxu3 }
  0xc7   : > { %v509_v34 = vpop.permute.xlu0 %508 }
  0xc8   : > { %v511_v35 = vpop.permute.xlu1 %510  ;;  %v688_v52 = vpop.permute.xlu2 %687 }
  0xc9   : > { %v515_v36 = vsel %vm514_vm5, %v509_v34, %v511_v35 }
  0xca   : > { %530 = vmatpush.bf16.msrb.mxu3 %v515_v36 }
  0xcb   : > { %886 = vmatmul.msk.bf16.vlgmr.msra.gmra.mxu2 %vm241_vm0, %v389_v27 }
  0xcd   : > { %885 = vmatmul.msk.bf16.vlgmr.msra.gmra.mxu1 %vm241_vm0, %v389_v27  ;;  %891 = vmatmul.msk.bf16.vlgmr.msrb.gmra.mxu3 %vm241_vm0, %v507_v37 }
  0xcf   : > { %v570_v39 = vpop.permute.xlu0 %569 }
  0xd0   : > { %v513_v40 = vpop.permute.xlu1 %512  ;;  %v574_v41 = vsel %vm573_vm6, %v568_v33, %v570_v39  ;;  %v575_v42 = vsel %vm573_vm6, %v570_v39, %v572_v38 }
  0xd1   : > { %589 = vmatpush.bf16.msra.mxu2 %v574_v41  ;;  %602 = vmatpush.bf16.msra.mxu3 %v575_v42  ;;  %v516_v43 = vsel %vm514_vm5, %v511_v35, %v513_v40 }
  0xd2   : > { %556 = vmatpush.bf16.msra.mxu1 %v513_v40 }
  0xd4   : > { %884 = vmatmul.msk.bf16.vlgmr.msra.gmra.mxu0 %vm241_vm0, %v1259_v13 }
  0xd5   : > { %543 = vmatpush.bf16.msra.mxu0 %v516_v43 }
  0xd7   : > { %v629_v44 = vpop.permute.xlu0 %628 }
  0xd8   : > { %v631_v47 = vpop.permute.xlu1 %630  ;;  %v633_v49 = vsel %vm632_vm7, %v627_v46, %v629_v44 }
  0xd9   : > { %v634_v48 = vsel %vm632_vm7, %v629_v44, %v631_v47  ;;  %674 = vmatpush.bf16.msrb.mxu3 %v631_v47 }
  0xdb   : > { %890 = vmatmul.msk.bf16.vlgmr.msrb.gmra.mxu2 %vm241_vm0, %v448_v45 }
  0xdc   : > { %661 = vmatpush.bf16.msrb.mxu2 %v634_v48 }
  0xdd   : > { %889 = vmatmul.msk.bf16.vlgmr.msrb.gmra.mxu1 %vm241_vm0, %v448_v45  ;;  %895 = vmatmul.msk.bf16.vlgmr.msra.gmra.mxu3 %vm241_vm0, %v566_v50 }
  0xde   : > { %648 = vmatpush.bf16.msrb.mxu1 %v633_v49 }
  0xdf   : > { %v690_v51 = vpop.permute.xlu0 %689 }
  0xe0   : > { %v693_v53 = vsel %vm691_vm8, %v688_v52, %v690_v51  ;;  %v686_v55 = vpop.permute.xlu1 %685 }
  0xe1   : > { %v692_v56 = vsel %vm691_vm8, %v686_v55, %v688_v52 }
  0xe4   : > { %888 = vmatmul.msk.bf16.vlgmr.msrb.gmra.mxu0 %vm241_vm0, %v448_v45 }
  0xe5   : > { %615 = vmatpush.bf16.msrb.mxu0 %v572_v38 }
  0xeb   : > { %894 = vmatmul.msk.bf16.vlgmr.msra.gmra.mxu2 %vm241_vm0, %v566_v50 }
  0xec   : > { %733 = vmatpush.bf16.msra.mxu2 %v690_v51 }
  0xed   : > { %893 = vmatmul.msk.bf16.vlgmr.msra.gmra.mxu1 %vm241_vm0, %v507_v37  ;;  %899 = vmatmul.msk.bf16.vlgmr.msrb.gmra.mxu3 %vm241_vm0, %v625_v54 }
  0xee   : > { %720 = vmatpush.bf16.msra.mxu1 %v693_v53 }
  0xf4   : > { %892 = vmatmul.msk.bf16.vlgmr.msra.gmra.mxu0 %vm241_vm0, %v507_v37 }
  0xf5   : > { %707 = vmatpush.bf16.msra.mxu0 %v692_v56 }
  0xfb   : > { %898 = vmatmul.msk.bf16.vlgmr.msrb.gmra.mxu2 %vm241_vm0, %v625_v54 }
  0xfd   : > { %897 = vmatmul.msk.bf16.vlgmr.msrb.gmra.mxu1 %vm241_vm0, %v625_v54 }
 0x104   : > { %896 = vmatmul.msk.bf16.vlgmr.msrb.gmra.mxu0 %vm241_vm0, %v566_v50 }
 0x10b   : > { %902 = vmatmul.msk.bf16.vlgmr.msra.gmra.mxu2 %vm241_vm0, %v684_v59 }
 0x10d   : > { %901 = vmatmul.msk.bf16.vlgmr.msra.gmra.mxu1 %vm241_vm0, %v684_v59 }
 0x114   : > { %900 = vmatmul.msk.bf16.vlgmr.msra.gmra.mxu0 %vm241_vm0, %v684_v59 }
 0x120   : > { %v368_v62 = vpop.f32.mrf.mxu3 }
 0x128   : > { %v370_v0 = vpop.f32.mrf.mxu3 }
 0x12a   : > { %v267_v63 = vpop.f32.mrf.mxu1 }
 0x12e   : > { %v280_v1 = vpop.f32.mrf.mxu2 }
 0x131   : > { %v254_v2 = vpop.f32.mrf.mxu0 }
 0x132   : > { %v269_v3 = vpop.f32.mrf.mxu1  ;;  %v300_v4 = vadd.f32 %v299_v60, %v254_v2 }
 0x136   : > { %v282_v5 = vpop.f32.mrf.mxu2 }
 0x139   : > { %v256_v6 = vpop.f32.mrf.mxu0 }
 0x13a   : > { %v325_v7 = vpop.f32.mrf.mxu1 }
 0x13b   : > { %v326_v8 = vadd.f32 %v325_v7, %v280_v1 }
 0x13e   : > { %v355_v9 = vpop.f32.mrf.mxu2 }
 0x13f   : > { %v385_v10 = vadd.f32 %v355_v9, %v300_v4  ;;  %v440_v11 = vpop.f32.mrf.mxu3 }
 0x141   : > { %v312_v12 = vpop.f32.mrf.mxu0 }
 0x142   : > { %v313_v13 = vadd.f32 %v312_v12, %v267_v63  ;;  %v327_v14 = vpop.f32.mrf.mxu1 }
 0x144   : > { %v386_v15 = vadd.f32 %v368_v62, %v313_v13  ;;  %v746_v62 = vpop.permute.xlu0 %745 }
 0x146   : > { %v357_v16 = vpop.f32.mrf.mxu2 }
 0x147   : > { %v442_v17 = vpop.f32.mrf.mxu3 }
 0x149   : > { %v314_v18 = vpop.f32.mrf.mxu0 }
 0x14a   : > { %v414_v19 = vpop.f32.mrf.mxu1 }
 0x14b   : > { %v444_v53 = vadd.f32 %v414_v19, %v385_v10 }
 0x14e   : > { %v427_v20 = vpop.f32.mrf.mxu2 }
 0x14f   : > { %v445_v47 = vadd.f32 %v427_v20, %v386_v15 }
 0x150   : > { %v532_v21 = vpop.f32.mrf.mxu3 }
 0x151   : > { %v381_v22 = vpop.f32.mrf.mxu0 }
 0x152   : > { %v387_v23 = vadd.f32 %v381_v22, %v326_v8  ;;  %v416_v24 = vpop.f32.mrf.mxu1 }
 0x154   : > { %v446_v25 = vadd.f32 %v440_v11, %v387_v23 }
 0x156   : > { %v429_v26 = vpop.f32.mrf.mxu2 }
 0x158   : > { %v534_v27 = vpop.f32.mrf.mxu3 }
 0x159   : > { %v383_v28 = vpop.f32.mrf.mxu0 }
 0x15a   : > { %v486_v29 = vpop.f32.mrf.mxu1 }
 0x15b   : > { %v504_v48 = vadd.f32 %v486_v29, %v445_v47 }
 0x15e   : > { %v499_v30 = vpop.f32.mrf.mxu2 }
 0x15f   : > { %v505_v52 = vadd.f32 %v499_v30, %v446_v25 }
 0x160   : > { %v604_v31 = vpop.f32.mrf.mxu3 }
 0x161   : > { %v473_v32 = vpop.f32.mrf.mxu0 }
 0x162   : > { %v488_v33 = vpop.f32.mrf.mxu1  ;;  %v503_v57 = vadd.f32 %v473_v32, %v444_v53 }
 0x164   : > { %v562_v0 = vadd.f32 %v532_v21, %v503_v57 }
 0x166   : > { %v501_v34 = vpop.f32.mrf.mxu2 }
 0x168   : > { %v606_v35 = vpop.f32.mrf.mxu3 }
 0x169   : > { %v475_v36 = vpop.f32.mrf.mxu0 }
 0x16a   : > { %v558_v37 = vpop.f32.mrf.mxu1 }
 0x16b   : > { %v564_v55 = vadd.f32 %v558_v37, %v505_v52 }
 0x16e   : > { %v591_v38 = vpop.f32.mrf.mxu2 }
 0x16f   : > { %v621_v3 = vadd.f32 %v591_v38, %v562_v0 }
 0x170   : > { %v676_v39 = vpop.f32.mrf.mxu3 }
 0x171   : > { %v545_v40 = vpop.f32.mrf.mxu0 }
 0x172   : > { %v560_v41 = vpop.f32.mrf.mxu1  ;;  %v563_v51 = vadd.f32 %v545_v40, %v504_v48 }
 0x174   : > { %v622_v56 = vadd.f32 %v604_v31, %v563_v51 }
 0x176   : > { %v593_v42 = vpop.f32.mrf.mxu2 }
 0x178   : > { %v678_v43 = vpop.f32.mrf.mxu3 }
 0x179   : > { %v547_v44 = vpop.f32.mrf.mxu0 }
 0x17a   : > { %v650_v45 = vpop.f32.mrf.mxu1 }
 0x17b   : > { %v680_v7 = vadd.f32 %v650_v45, %v621_v3 }
 0x17e   : > { %v663_v46 = vpop.f32.mrf.mxu2 }
 0x17f   : > { %v681_v58 = vadd.f32 %v663_v46, %v622_v56 }
 0x181   : > { %v617_v49 = vpop.f32.mrf.mxu0 }
 0x182   : > { %v652_v50 = vpop.f32.mrf.mxu1  ;;  %v623_v59 = vadd.f32 %v617_v49, %v564_v55 }
 0x184   : > { %v682_v1 = vadd.f32 %v676_v39, %v623_v59 }
 0x186   : > { %v665_v54 = vpop.f32.mrf.mxu2 }
 0x189   : > { %v619_v60 = vpop.f32.mrf.mxu0 }
 0x18a   : > { %v722_v61 = vpop.f32.mrf.mxu1 }
 0x18b   : > { %v740_v63 = vadd.f32 %v722_v61, %v681_v58 }
 0x18d   : > { %v749_v2 = vadd.f32 %v746_v62, %v740_v63 }
 0x18e   : > { %v735_v4 = vpop.f32.mrf.mxu2 }
 0x18f   : > { %v752_v5 = vmax.f32 %v749_v2, 0.0  ;;  %v741_v6 = vadd.f32 %v735_v4, %v682_v1 }
 0x191   : > { %755 = vst [vmem:[%s207_s21 + $0x8] sm:$0xff] %v752_v5  ;;  %v750_v8 = vadd.f32 %v746_v62, %v741_v6  ;;  %v709_v9 = vpop.f32.mrf.mxu0 }
 0x192   : > { %v739_v10 = vadd.f32 %v709_v9, %v680_v7  ;;  %v724_v11 = vpop.f32.mrf.mxu1 }
 0x193   : > { %v753_v12 = vmax.f32 %v750_v8, 0.0 }
 0x194   : > { %v748_v13 = vadd.f32 %v746_v62, %v739_v10 }
 0x195   : > { %757 = vst.msk [vmem:[%s207_s21 + $0x10] sm:$0xff] %vm756_vm9, %v753_v12 }
 0x196   : > { %v751_v14 = vmax.f32 %v748_v13, 0.0  ;;  %v737_v15 = vpop.f32.mrf.mxu2 }
 0x198   : > { %754 = vst [vmem:[%s207_s21] sm:$0xff] %v751_v14 }
 0x199   : > { %v711_v16 = vpop.f32.mrf.mxu0 }
 0x19a   : > { %1071 = shalt.err (!%p1068_p10)
}
 0x19b   : > { %919 = dma.vmem_to_hbm [thread:$0]  (%p1217_p7), %s773_s16, 384, %s775_s17, %s759_s11  }
 0x19c PF: > { %s786_s10 = sand.u32 1, %s1102_s12   ;;  %p1340_p12 = scmp.ge.s32.totalorder %s1114_s15, 2 }
 0x19d   : > { %s787_s28 = scalar_lea.sflag [#allocation4], %s786_s10 }
 0x19e   : > { %p930_p13 = pnand %p1340_p12, %p1185_p6 }
 0x1a0   : > { %p931_p0 = pneg %p930_p13 }
 0x1a2   : > { %1097 = dma.done.wait (%p931_p0), %s787_s28, 384  }
 0x1a3   : > { %1099 = vsyncadd (%p931_p0), %s787_s28, 4294966912  ;;  %p17_p3 = scmp.ge.s32.totalorder %s1203_s26, 4   ;;  %s1341_s12 = smov %s1106_s13 }
 0x1a4   : > { %s1342_s13 = smov %s1110_s14  ;;  %s1343_s14 = smov %s1213_s4 }
 0x1a5   : > { %s1344_s15 = smov %s1203_s26  ;;  %19 = sbr.rel (!%p17_p3) target bundleno = 6 (0x6), region = 90 }
 0x1aa   :  { %793 = vsyncpa [#allocation3], 1 }
 0x1ab   :  { %795 = vsyncpa [#allocation3 + $0x1], 1 }
 0x1ac   :  { %796 = vsyncpa [#allocation6], 1 }
 0x1ad   :  { %798 = vsyncpa [#allocation6 + $0x1], 1 }
 0x1ae   :  { %799 = vsyncpa [#allocation4], 1 }
 0x1af   :  { %801 = vsyncpa [#allocation4 + $0x1], 1 }

</bundles_post_ra>
